<compile_context>
chip_gen: v5e
topology: v5e:2x2
jax: 0.10.0
libtpu: 0.0.40
codegen_flags: <defaults>
</compile_context>

<pallas_src>
import numpy as np
import jax
import jax.numpy as jnp
from jax.experimental import pallas as pl
from jax.experimental.pallas import tpu as pltpu

HIDDEN_DIMS = [256, 128, 64]
LN_EPS = 1e-5
NEG_SLOPE = 0.01


def _critic_kernel(obs_ref, act_ref, w0o_ref, w0a_ref, w1f_ref, w2f_ref,
                   vec_ref, out_ref):
    mm_dtype = w0o_ref.dtype
    f32 = jnp.float32

    def ln_lrelu(h, g, b, n):
        # One-pass LayerNorm stats in f32 (var = E[h^2] - mu^2, clamped), then
        # leaky-ReLU.
        inv_n = 1.0 / n
        mu = jnp.sum(h, axis=-1, keepdims=True) * inv_n
        ex2 = jnp.sum(h * h, axis=-1, keepdims=True) * inv_n
        var = jnp.maximum(ex2 - mu * mu, 0.0)
        y = (h - mu) * jax.lax.rsqrt(var + LN_EPS) * g + b
        return jnp.where(y > 0, y, NEG_SLOPE * y)

    # Packed per-layer vectors (all f32, one small VMEM table).
    b0, g0, be0 = vec_ref[0:1, :], vec_ref[1:2, :], vec_ref[2:3, :]
    b1, g1, be1, rb0 = (vec_ref[3:4, :128], vec_ref[4:5, :128],
                        vec_ref[5:6, :128], vec_ref[6:7, :128])
    b2, g2, be2, rb1 = (vec_ref[7:8, :64], vec_ref[8:9, :64],
                        vec_ref[9:10, :64], vec_ref[10:11, :64])
    wo = vec_ref[11:12, :64]
    bo = vec_ref[12:13, 0:1]

    obs = obs_ref[...].astype(mm_dtype)
    act = act_ref[...].astype(mm_dtype)

    # Block 0: Linear (split over obs/act) -> LayerNorm -> LeakyReLU  (tb, 256)
    h0 = (jnp.dot(obs, w0o_ref[...], preferred_element_type=f32)
          + jnp.dot(act, w0a_ref[...], preferred_element_type=f32) + b0)
    h0 = ln_lrelu(h0, g0, be0, h0.shape[-1])

    # Block 1: one fused matmul against [w1 | rw0]; LN path (cols :128) plus
    # residual path (cols 128:).  Split is on a 128-lane boundary (free).
    cat1 = jnp.dot(h0.astype(mm_dtype), w1f_ref[...], preferred_element_type=f32)
    h1 = ln_lrelu(cat1[:, :128] + b1, g1, be1, 128)
    h1 = h1 + cat1[:, 128:] + rb0

    # Block 2: fused matmul against [w2 | rw1].                       (tb, 64)
    cat2 = jnp.dot(h1.astype(mm_dtype), w2f_ref[...], preferred_element_type=f32)
    h2 = ln_lrelu(cat2[:, :64] + b2, g2, be2, 64)
    h2 = h2 + cat2[:, 64:] + rb1

    # Output head: VPU multiply + row reduce (no N=1 MXU pass); write a narrow
    # (tb, 1) f32 column -> 4 B/row of HBM traffic.
    out_ref[...] = jnp.sum(h2 * wo, axis=-1, keepdims=True) + bo


def _round_up(n, m):
    return ((n + m - 1) // m) * m


def _num_tensorcores():
    """Best-effort TensorCores-per-chip count (2 on v7x, 1 on v5e/v6e)."""
    try:
        info = pltpu.get_tpu_info()
        for attr in ("num_cores", "core_count", "num_tensor_cores",
                     "tensorcore_count"):
            v = getattr(info, attr, None)
            if isinstance(v, int) and v >= 1:
                return v
    except Exception:
        pass
    try:
        v = getattr(jax.local_devices()[0], "num_cores", None)
        if isinstance(v, int) and v >= 1:
            return v
    except Exception:
        pass
    return 1


def _choose_batch_tiling(B, block_rows, granule=128, sublane=16):
    """Pick (Bp, tb).  Tiny B -> one sublane-rounded tile; otherwise tiles are
    `granule`-row multiples capped at block_rows, with >=2 grid tiles forced on
    multi-TensorCore chips so the 'parallel' dimension uses both cores."""
    if B <= granule:
        tb = _round_up(max(B, sublane), sublane)
        return tb, tb
    block_rows = max(_round_up(block_rows, granule), granule)
    tb = min(block_rows, _round_up(B, granule))
    if _num_tensorcores() >= 2 and _round_up(B, tb) // tb < 2:
        tb = max(granule, _round_up(pl.cdiv(B, 2), granule))
    Bp = _round_up(B, tb)
    return Bp, tb


def pack_critic_params(params, obs_dim, action_dim, matmul_dtype=jnp.bfloat16):
    """Pack the 18 per-layer tensors into 5 kernel operands: split/padded w0,
    fused [w1|rw0] and [w2|rw1], and one (16, 256) f32 vector table."""
    def row(v, width=256):
        v = jnp.asarray(v, jnp.float32).reshape(-1)
        return jnp.pad(v, (0, width - v.shape[0]))

    kp_obs = _round_up(obs_dim, 16)
    kp_act = _round_up(action_dim, 16)
    w0 = jnp.asarray(params["w0"], jnp.float32)                     # (obs+act, 256)
    w0o = jnp.pad(w0[:obs_dim], ((0, kp_obs - obs_dim), (0, 0))).astype(matmul_dtype)
    w0a = jnp.pad(w0[obs_dim:], ((0, kp_act - action_dim), (0, 0))).astype(matmul_dtype)
    w1f = jnp.concatenate([params["w1"], params["rw0"]], axis=1).astype(matmul_dtype)
    w2f = jnp.concatenate([params["w2"], params["rw1"]], axis=1).astype(matmul_dtype)

    rows = [
        row(params["b0"]), row(params["g0"]), row(params["be0"]),
        row(params["b1"]), row(params["g1"]), row(params["be1"]), row(params["rb0"]),
        row(params["b2"]), row(params["g2"]), row(params["be2"]), row(params["rb1"]),
        row(params["wo"]), row(params["bo"]),
    ]
    rows += [jnp.zeros((256,), jnp.float32)] * (16 - len(rows))
    vec = jnp.stack(rows, axis=0)                                   # (16, 256) f32
    return w0o, w0a, w1f, w2f, vec


def critic_forward(obs, action, params, *, block_rows=512, matmul_dtype=jnp.bfloat16):
    B, obs_dim = obs.shape
    _, act_dim = action.shape
    kp_obs = _round_up(obs_dim, 16)
    kp_act = _round_up(act_dim, 16)

    Bp, tb = _choose_batch_tiling(B, block_rows)

    # One fused cast+pad per input: batch pad so the grid divides evenly,
    # feature pad keeps the bf16 contraction dim 16-aligned.  Zero pads are
    # exact (they multiply zero weight rows / are sliced off below).
    obs_p = jnp.pad(obs.astype(matmul_dtype), ((0, Bp - B), (0, kp_obs - obs_dim)))
    act_p = jnp.pad(action.astype(matmul_dtype), ((0, Bp - B), (0, kp_act - act_dim)))

    w0o, w0a, w1f, w2f, vec = pack_critic_params(params, obs_dim, act_dim, matmul_dtype)

    def const_spec(arr):
        return pl.BlockSpec(arr.shape, lambda i: (0, 0))      # VMEM-resident weights

    out = pl.pallas_call(
        _critic_kernel,
        out_shape=jax.ShapeDtypeStruct((Bp, 1), jnp.float32),
        grid=(Bp // tb,),
        in_specs=[
            pl.BlockSpec((tb, kp_obs), lambda i: (i, 0)),      # obs: pipelined over batch
            pl.BlockSpec((tb, kp_act), lambda i: (i, 0)),      # action
            const_spec(w0o), const_spec(w0a), const_spec(w1f), const_spec(w2f),
            const_spec(vec),
        ],
        out_specs=pl.BlockSpec((tb, 1), lambda i: (i, 0)),     # narrow f32 column
        compiler_params=pltpu.CompilerParams(
            dimension_semantics=("parallel",)),
    )(obs_p, act_p, w0o, w0a, w1f, w2f, vec)
    return out[:B]


def init_critic_params(key, obs_dim, action_dim, hidden_dims=HIDDEN_DIMS):
    """Orthogonal(gain=sqrt(2)) weights, zero biases (matches _init_weights).
    Linear weights are stored transposed to (in, out)."""
    ortho = jax.nn.initializers.orthogonal(scale=float(np.sqrt(2.0)))
    params = {}
    prev = obs_dim + action_dim
    keys = jax.random.split(key, 16)
    k_iter = iter(keys)
    for i, h in enumerate(hidden_dims):
        w = ortho(next(k_iter), (h, prev), jnp.float32)        # PyTorch shape (out, in)
        params[f"w{i}"] = jnp.asarray(w).T                     # -> (in, out)
        params[f"b{i}"] = jnp.zeros((1, h), jnp.float32)
        params[f"g{i}"] = jnp.ones((1, h), jnp.float32)        # LayerNorm weight
        params[f"be{i}"] = jnp.zeros((1, h), jnp.float32)      # LayerNorm bias
        prev = h
    for i in range(len(hidden_dims) - 1):
        h_in, h_out = hidden_dims[i], hidden_dims[i + 1]
        rw = ortho(next(k_iter), (h_out, h_in), jnp.float32)
        params[f"rw{i}"] = jnp.asarray(rw).T
        params[f"rb{i}"] = jnp.zeros((1, h_out), jnp.float32)
    wo = ortho(next(k_iter), (1, prev), jnp.float32)
    params["wo"] = jnp.asarray(wo).T                           # (prev, 1)
    params["bo"] = jnp.zeros((1, 1), jnp.float32)
    return params


def critic_forward_ref(obs, action, params, matmul_dtype=jnp.float32):
    """Pure-JAX reference (PyTorch semantics; optional bf16 matmul operands)."""
    def ln(h, g, b):
        mu = jnp.mean(h, axis=-1, keepdims=True)
        var = jnp.mean((h - mu) ** 2, axis=-1, keepdims=True)
        return (h - mu) / jnp.sqrt(var + LN_EPS) * g + b

    def lrelu(h):
        return jnp.where(h > 0, h, NEG_SLOPE * h)

    def mm(a, w):
        return jnp.dot(a.astype(matmul_dtype), w.astype(matmul_dtype),
                       preferred_element_type=jnp.float32)

    x = jnp.concatenate([obs, action], axis=-1).astype(jnp.float32)
    h0 = lrelu(ln(mm(x, params["w0"]) + params["b0"], params["g0"], params["be0"]))
    h1 = lrelu(ln(mm(h0, params["w1"]) + params["b1"], params["g1"], params["be1"]))
    h1 = h1 + mm(h0, params["rw0"]) + params["rb0"]
    h2 = lrelu(ln(mm(h1, params["w2"]) + params["b2"], params["g2"], params["be2"]))
    h2 = h2 + mm(h1, params["rw1"]) + params["rb1"]
    return mm(h2, params["wo"]) + params["bo"]


if __name__ == "__main__":
    key = jax.random.PRNGKey(0)
    k_obs, k_act, k_param, k_obs2, k_act2 = jax.random.split(key, 5)

    OBS_DIM, ACT_DIM = 24, 8
    params = init_critic_params(k_param, OBS_DIM, ACT_DIM)

    # 1) Small batch, f32 matmuls: tight parity with the PyTorch-semantics ref.
    B = 8
    obs = jax.random.normal(k_obs, (B, OBS_DIM), jnp.float32)
    action = jax.random.normal(k_act, (B, ACT_DIM), jnp.float32)
    out32 = jax.block_until_ready(
        critic_forward(obs, action, params, matmul_dtype=jnp.float32))
    ref32 = critic_forward_ref(obs, action, params, matmul_dtype=jnp.float32)
    assert out32.shape == (B, 1)
    np.testing.assert_allclose(np.asarray(out32), np.asarray(ref32),
                               rtol=5e-4, atol=5e-4)

    # 2) Larger batch exercising the batch grid (3 tiles of 128 rows) with the
    #    default bf16 matmul path, checked against a bf16-casting reference.
    B2 = 300
    obs2 = jax.random.normal(k_obs2, (B2, OBS_DIM), jnp.float32)
    act2 = jax.random.normal(k_act2, (B2, ACT_DIM), jnp.float32)
    out_bf = jax.block_until_ready(
        critic_forward(obs2, act2, params, block_rows=128,
                       matmul_dtype=jnp.bfloat16))
    ref_bf = critic_forward_ref(obs2, act2, params, matmul_dtype=jnp.bfloat16)
    assert out_bf.shape == (B2, 1)
    np.testing.assert_allclose(np.asarray(out_bf), np.asarray(ref_bf),
                               rtol=2e-2, atol=2e-2)

    print("KERNEL_OK")
</pallas_src>

<mosaic_0001>
module attributes {stable_mosaic.version = 11 : i64} {
  func.func @_critic_kernel(%arg0: i32, %arg1: memref<16x32xf32, #tpu.memory_space<vmem>>, %arg2: memref<16x16xf32, #tpu.memory_space<vmem>>, %arg3: memref<32x256xf32, #tpu.memory_space<vmem>>, %arg4: memref<16x256xf32, #tpu.memory_space<vmem>>, %arg5: memref<256x256xf32, #tpu.memory_space<vmem>>, %arg6: memref<128x128xf32, #tpu.memory_space<vmem>>, %arg7: memref<16x256xf32, #tpu.memory_space<vmem>>, %arg8: memref<16x1xf32, #tpu.memory_space<vmem>>) attributes {dimension_semantics = [#tpu.dimension_semantics<parallel>], iteration_bounds = array<i64: 1>, scalar_prefetch = 0 : i64, scratch_operands = 0 : i64, tpu.core_type = #tpu.core_type<tc>, window_params = [{transform_indices = @transform_0, window_bounds = array<i64: 16, 32>}, {transform_indices = @transform_1, window_bounds = array<i64: 16, 16>}, {pipeline_mode = #tpu.pipeline_mode<synchronous>, transform_indices = @transform_2, window_bounds = array<i64: 32, 256>}, {pipeline_mode = #tpu.pipeline_mode<synchronous>, transform_indices = @transform_3, window_bounds = array<i64: 16, 256>}, {pipeline_mode = #tpu.pipeline_mode<synchronous>, transform_indices = @transform_4, window_bounds = array<i64: 256, 256>}, {pipeline_mode = #tpu.pipeline_mode<synchronous>, transform_indices = @transform_5, window_bounds = array<i64: 128, 128>}, {pipeline_mode = #tpu.pipeline_mode<synchronous>, transform_indices = @transform_6, window_bounds = array<i64: 16, 256>}, {transform_indices = @transform_7, window_bounds = array<i64: 16, 1>}]} {
    %c0 = arith.constant 0 : index
    %c0_0 = arith.constant 0 : index
    %0 = vector.load %arg7[%c0, %c0_0] : memref<16x256xf32, #tpu.memory_space<vmem>>, vector<1x256xf32>
    %c1 = arith.constant 1 : index
    %c0_1 = arith.constant 0 : index
    %1 = vector.load %arg7[%c1, %c0_1] : memref<16x256xf32, #tpu.memory_space<vmem>>, vector<1x256xf32>
    %c2 = arith.constant 2 : index
    %c0_2 = arith.constant 0 : index
    %2 = vector.load %arg7[%c2, %c0_2] : memref<16x256xf32, #tpu.memory_space<vmem>>, vector<1x256xf32>
    %c3 = arith.constant 3 : index
    %c0_3 = arith.constant 0 : index
    %3 = vector.load %arg7[%c3, %c0_3] : memref<16x256xf32, #tpu.memory_space<vmem>>, vector<1x128xf32>
    %c4 = arith.constant 4 : index
    %c0_4 = arith.constant 0 : index
    %4 = vector.load %arg7[%c4, %c0_4] : memref<16x256xf32, #tpu.memory_space<vmem>>, vector<1x128xf32>
    %c5 = arith.constant 5 : index
    %c0_5 = arith.constant 0 : index
    %5 = vector.load %arg7[%c5, %c0_5] : memref<16x256xf32, #tpu.memory_space<vmem>>, vector<1x128xf32>
    %c6 = arith.constant 6 : index
    %c0_6 = arith.constant 0 : index
    %6 = vector.load %arg7[%c6, %c0_6] : memref<16x256xf32, #tpu.memory_space<vmem>>, vector<1x128xf32>
    %c7 = arith.constant 7 : index
    %c0_7 = arith.constant 0 : index
    %7 = vector.load %arg7[%c7, %c0_7] : memref<16x256xf32, #tpu.memory_space<vmem>>, vector<1x64xf32>
    %c8 = arith.constant 8 : index
    %c0_8 = arith.constant 0 : index
    %8 = vector.load %arg7[%c8, %c0_8] : memref<16x256xf32, #tpu.memory_space<vmem>>, vector<1x64xf32>
    %c9 = arith.constant 9 : index
    %c0_9 = arith.constant 0 : index
    %9 = vector.load %arg7[%c9, %c0_9] : memref<16x256xf32, #tpu.memory_space<vmem>>, vector<1x64xf32>
    %c10 = arith.constant 10 : index
    %c0_10 = arith.constant 0 : index
    %10 = vector.load %arg7[%c10, %c0_10] : memref<16x256xf32, #tpu.memory_space<vmem>>, vector<1x64xf32>
    %c11 = arith.constant 11 : index
    %c0_11 = arith.constant 0 : index
    %11 = vector.load %arg7[%c11, %c0_11] : memref<16x256xf32, #tpu.memory_space<vmem>>, vector<1x64xf32>
    %c12 = arith.constant 12 : index
    %c0_12 = arith.constant 0 : index
    %12 = vector.load %arg7[%c12, %c0_12] : memref<16x256xf32, #tpu.memory_space<vmem>>, vector<1x1xf32>
    %c0_13 = arith.constant 0 : index
    %c0_14 = arith.constant 0 : index
    %13 = vector.load %arg1[%c0_13, %c0_14] : memref<16x32xf32, #tpu.memory_space<vmem>>, vector<16x32xf32>
    %c0_15 = arith.constant 0 : index
    %c0_16 = arith.constant 0 : index
    %14 = vector.load %arg2[%c0_15, %c0_16] : memref<16x16xf32, #tpu.memory_space<vmem>>, vector<16x16xf32>
    %c0_17 = arith.constant 0 : index
    %c0_18 = arith.constant 0 : index
    %15 = vector.load %arg3[%c0_17, %c0_18] : memref<32x256xf32, #tpu.memory_space<vmem>>, vector<32x256xf32>
    %cst = arith.constant dense<0.000000e+00> : vector<16x256xf32>
    %16 = tpu.matmul %13, %15, %cst {dimension_numbers = #tpu.dot_dimension_numbers<[1], [0], [0], [1], [0, 0, 1, 1], [], []>} : vector<16x32xf32>, vector<32x256xf32>, vector<16x256xf32> -> vector<16x256xf32>
    %c0_19 = arith.constant 0 : index
    %c0_20 = arith.constant 0 : index
    %17 = vector.load %arg4[%c0_19, %c0_20] : memref<16x256xf32, #tpu.memory_space<vmem>>, vector<16x256xf32>
    %cst_21 = arith.constant dense<0.000000e+00> : vector<16x256xf32>
    %18 = tpu.matmul %14, %17, %cst_21 {dimension_numbers = #tpu.dot_dimension_numbers<[1], [0], [0], [1], [0, 0, 1, 1], [], []>} : vector<16x16xf32>, vector<16x256xf32>, vector<16x256xf32> -> vector<16x256xf32>
    %19 = arith.addf %16, %18 : vector<16x256xf32>
    %20 = vector.broadcast %0 : vector<1x256xf32> to vector<16x256xf32>
    %21 = arith.addf %19, %20 : vector<16x256xf32>
    %cst_22 = arith.constant dense<0.000000e+00> : vector<16xf32>
    %22 = vector.multi_reduction <add>, %21, %cst_22 [1] : vector<16x256xf32> to vector<16xf32>
    %23 = vector.shape_cast %22 : vector<16xf32> to vector<16x1xf32>
    %cst_23 = arith.constant 3.906250e-03 : f32
    %24 = vector.broadcast %cst_23 : f32 to vector<16x1xf32>
    %25 = arith.mulf %23, %24 : vector<16x1xf32>
    %26 = arith.mulf %21, %21 : vector<16x256xf32>
    %cst_24 = arith.constant dense<0.000000e+00> : vector<16xf32>
    %27 = vector.multi_reduction <add>, %26, %cst_24 [1] : vector<16x256xf32> to vector<16xf32>
    %28 = vector.shape_cast %27 : vector<16xf32> to vector<16x1xf32>
    %cst_25 = arith.constant 3.906250e-03 : f32
    %29 = vector.broadcast %cst_25 : f32 to vector<16x1xf32>
    %30 = arith.mulf %28, %29 : vector<16x1xf32>
    %31 = arith.mulf %25, %25 : vector<16x1xf32>
    %32 = arith.subf %30, %31 : vector<16x1xf32>
    %cst_26 = arith.constant 0.000000e+00 : f32
    %33 = vector.broadcast %cst_26 : f32 to vector<16x1xf32>
    %34 = arith.maximumf %32, %33 : vector<16x1xf32>
    %35 = vector.broadcast %25 : vector<16x1xf32> to vector<16x256xf32>
    %36 = arith.subf %21, %35 : vector<16x256xf32>
    %cst_27 = arith.constant 9.99999974E-6 : f32
    %37 = vector.broadcast %cst_27 : f32 to vector<16x1xf32>
    %38 = arith.addf %34, %37 : vector<16x1xf32>
    %39 = math.rsqrt %38 : vector<16x1xf32>
    %40 = vector.broadcast %39 : vector<16x1xf32> to vector<16x256xf32>
    %41 = arith.mulf %36, %40 : vector<16x256xf32>
    %42 = vector.broadcast %1 : vector<1x256xf32> to vector<16x256xf32>
    %43 = arith.mulf %41, %42 : vector<16x256xf32>
    %44 = vector.broadcast %2 : vector<1x256xf32> to vector<16x256xf32>
    %45 = arith.addf %43, %44 : vector<16x256xf32>
    %cst_28 = arith.constant 0.000000e+00 : f32
    %46 = vector.broadcast %cst_28 : f32 to vector<16x256xf32>
    %47 = arith.cmpf ogt, %45, %46 : vector<16x256xf32>
    %cst_29 = arith.constant 0.00999999977 : f32
    %48 = vector.broadcast %cst_29 : f32 to vector<16x256xf32>
    %49 = arith.mulf %48, %45 : vector<16x256xf32>
    %50 = arith.select %47, %45, %49 : vector<16x256xi1>, vector<16x256xf32>
    %c0_30 = arith.constant 0 : index
    %c0_31 = arith.constant 0 : index
    %51 = vector.load %arg5[%c0_30, %c0_31] : memref<256x256xf32, #tpu.memory_space<vmem>>, vector<256x256xf32>
    %cst_32 = arith.constant dense<0.000000e+00> : vector<16x256xf32>
    %52 = tpu.matmul %50, %51, %cst_32 {dimension_numbers = #tpu.dot_dimension_numbers<[1], [0], [0], [1], [0, 0, 1, 1], [], []>} : vector<16x256xf32>, vector<256x256xf32>, vector<16x256xf32> -> vector<16x256xf32>
    %53 = vector.extract_strided_slice %52 {offsets = [0, 0], sizes = [16, 128], strides = [1, 1]} : vector<16x256xf32> to vector<16x128xf32>
    %54 = vector.broadcast %3 : vector<1x128xf32> to vector<16x128xf32>
    %55 = arith.addf %53, %54 : vector<16x128xf32>
    %cst_33 = arith.constant dense<0.000000e+00> : vector<16xf32>
    %56 = vector.multi_reduction <add>, %55, %cst_33 [1] : vector<16x128xf32> to vector<16xf32>
    %57 = vector.shape_cast %56 : vector<16xf32> to vector<16x1xf32>
    %cst_34 = arith.constant 7.812500e-03 : f32
    %58 = vector.broadcast %cst_34 : f32 to vector<16x1xf32>
    %59 = arith.mulf %57, %58 : vector<16x1xf32>
    %60 = arith.mulf %55, %55 : vector<16x128xf32>
    %cst_35 = arith.constant dense<0.000000e+00> : vector<16xf32>
    %61 = vector.multi_reduction <add>, %60, %cst_35 [1] : vector<16x128xf32> to vector<16xf32>
    %62 = vector.shape_cast %61 : vector<16xf32> to vector<16x1xf32>
    %cst_36 = arith.constant 7.812500e-03 : f32
    %63 = vector.broadcast %cst_36 : f32 to vector<16x1xf32>
    %64 = arith.mulf %62, %63 : vector<16x1xf32>
    %65 = arith.mulf %59, %59 : vector<16x1xf32>
    %66 = arith.subf %64, %65 : vector<16x1xf32>
    %cst_37 = arith.constant 0.000000e+00 : f32
    %67 = vector.broadcast %cst_37 : f32 to vector<16x1xf32>
    %68 = arith.maximumf %66, %67 : vector<16x1xf32>
    %69 = vector.broadcast %59 : vector<16x1xf32> to vector<16x128xf32>
    %70 = arith.subf %55, %69 : vector<16x128xf32>
    %cst_38 = arith.constant 9.99999974E-6 : f32
    %71 = vector.broadcast %cst_38 : f32 to vector<16x1xf32>
    %72 = arith.addf %68, %71 : vector<16x1xf32>
    %73 = math.rsqrt %72 : vector<16x1xf32>
    %74 = vector.broadcast %73 : vector<16x1xf32> to vector<16x128xf32>
    %75 = arith.mulf %70, %74 : vector<16x128xf32>
    %76 = vector.broadcast %4 : vector<1x128xf32> to vector<16x128xf32>
    %77 = arith.mulf %75, %76 : vector<16x128xf32>
    %78 = vector.broadcast %5 : vector<1x128xf32> to vector<16x128xf32>
    %79 = arith.addf %77, %78 : vector<16x128xf32>
    %cst_39 = arith.constant 0.000000e+00 : f32
    %80 = vector.broadcast %cst_39 : f32 to vector<16x128xf32>
    %81 = arith.cmpf ogt, %79, %80 : vector<16x128xf32>
    %cst_40 = arith.constant 0.00999999977 : f32
    %82 = vector.broadcast %cst_40 : f32 to vector<16x128xf32>
    %83 = arith.mulf %82, %79 : vector<16x128xf32>
    %84 = arith.select %81, %79, %83 : vector<16x128xi1>, vector<16x128xf32>
    %85 = vector.extract_strided_slice %52 {offsets = [0, 128], sizes = [16, 128], strides = [1, 1]} : vector<16x256xf32> to vector<16x128xf32>
    %86 = arith.addf %84, %85 : vector<16x128xf32>
    %87 = vector.broadcast %6 : vector<1x128xf32> to vector<16x128xf32>
    %88 = arith.addf %86, %87 : vector<16x128xf32>
    %c0_41 = arith.constant 0 : index
    %c0_42 = arith.constant 0 : index
    %89 = vector.load %arg6[%c0_41, %c0_42] : memref<128x128xf32, #tpu.memory_space<vmem>>, vector<128x128xf32>
    %cst_43 = arith.constant dense<0.000000e+00> : vector<16x128xf32>
    %90 = tpu.matmul %88, %89, %cst_43 {dimension_numbers = #tpu.dot_dimension_numbers<[1], [0], [0], [1], [0, 0, 1, 1], [], []>} : vector<16x128xf32>, vector<128x128xf32>, vector<16x128xf32> -> vector<16x128xf32>
    %91 = vector.extract_strided_slice %90 {offsets = [0, 0], sizes = [16, 64], strides = [1, 1]} : vector<16x128xf32> to vector<16x64xf32>
    %92 = vector.broadcast %7 : vector<1x64xf32> to vector<16x64xf32>
    %93 = arith.addf %91, %92 : vector<16x64xf32>
    %cst_44 = arith.constant dense<0.000000e+00> : vector<16xf32>
    %94 = vector.multi_reduction <add>, %93, %cst_44 [1] : vector<16x64xf32> to vector<16xf32>
    %95 = vector.shape_cast %94 : vector<16xf32> to vector<16x1xf32>
    %cst_45 = arith.constant 1.562500e-02 : f32
    %96 = vector.broadcast %cst_45 : f32 to vector<16x1xf32>
    %97 = arith.mulf %95, %96 : vector<16x1xf32>
    %98 = arith.mulf %93, %93 : vector<16x64xf32>
    %cst_46 = arith.constant dense<0.000000e+00> : vector<16xf32>
    %99 = vector.multi_reduction <add>, %98, %cst_46 [1] : vector<16x64xf32> to vector<16xf32>
    %100 = vector.shape_cast %99 : vector<16xf32> to vector<16x1xf32>
    %cst_47 = arith.constant 1.562500e-02 : f32
    %101 = vector.broadcast %cst_47 : f32 to vector<16x1xf32>
    %102 = arith.mulf %100, %101 : vector<16x1xf32>
    %103 = arith.mulf %97, %97 : vector<16x1xf32>
    %104 = arith.subf %102, %103 : vector<16x1xf32>
    %cst_48 = arith.constant 0.000000e+00 : f32
    %105 = vector.broadcast %cst_48 : f32 to vector<16x1xf32>
    %106 = arith.maximumf %104, %105 : vector<16x1xf32>
    %107 = vector.broadcast %97 : vector<16x1xf32> to vector<16x64xf32>
    %108 = arith.subf %93, %107 : vector<16x64xf32>
    %cst_49 = arith.constant 9.99999974E-6 : f32
    %109 = vector.broadcast %cst_49 : f32 to vector<16x1xf32>
    %110 = arith.addf %106, %109 : vector<16x1xf32>
    %111 = math.rsqrt %110 : vector<16x1xf32>
    %112 = vector.broadcast %111 : vector<16x1xf32> to vector<16x64xf32>
    %113 = arith.mulf %108, %112 : vector<16x64xf32>
    %114 = vector.broadcast %8 : vector<1x64xf32> to vector<16x64xf32>
    %115 = arith.mulf %113, %114 : vector<16x64xf32>
    %116 = vector.broadcast %9 : vector<1x64xf32> to vector<16x64xf32>
    %117 = arith.addf %115, %116 : vector<16x64xf32>
    %cst_50 = arith.constant 0.000000e+00 : f32
    %118 = vector.broadcast %cst_50 : f32 to vector<16x64xf32>
    %119 = arith.cmpf ogt, %117, %118 : vector<16x64xf32>
    %cst_51 = arith.constant 0.00999999977 : f32
    %120 = vector.broadcast %cst_51 : f32 to vector<16x64xf32>
    %121 = arith.mulf %120, %117 : vector<16x64xf32>
    %122 = arith.select %119, %117, %121 : vector<16x64xi1>, vector<16x64xf32>
    %123 = vector.extract_strided_slice %90 {offsets = [0, 64], sizes = [16, 64], strides = [1, 1]} : vector<16x128xf32> to vector<16x64xf32>
    %124 = arith.addf %122, %123 : vector<16x64xf32>
    %125 = vector.broadcast %10 : vector<1x64xf32> to vector<16x64xf32>
    %126 = arith.addf %124, %125 : vector<16x64xf32>
    %127 = vector.broadcast %11 : vector<1x64xf32> to vector<16x64xf32>
    %128 = arith.mulf %126, %127 : vector<16x64xf32>
    %cst_52 = arith.constant dense<0.000000e+00> : vector<16xf32>
    %129 = vector.multi_reduction <add>, %128, %cst_52 [1] : vector<16x64xf32> to vector<16xf32>
    %130 = vector.shape_cast %129 : vector<16xf32> to vector<16x1xf32>
    %131 = vector.broadcast %12 : vector<1x1xf32> to vector<16x1xf32>
    %132 = arith.addf %130, %131 : vector<16x1xf32>
    %c0_53 = arith.constant 0 : index
    %c0_54 = arith.constant 0 : index
    %133 = vector.load %arg8[%c0_53, %c0_54] : memref<16x1xf32, #tpu.memory_space<vmem>>, vector<16x1xf32>
    tpu.vector_store %arg8[%c0_53, %c0_54], %132 {strides = array<i32>} : memref<16x1xf32, #tpu.memory_space<vmem>>, vector<16x1xf32>,
    return
  }
  func.func @transform_0(%arg0: i32) -> (i32, i32) {
    %c0_i32 = arith.constant 0 : i32
    %c0_i32_0 = arith.constant 0 : i32
    return %arg0, %c0_i32 : i32, i32
  }
  func.func @transform_1(%arg0: i32) -> (i32, i32) {
    %c0_i32 = arith.constant 0 : i32
    %c0_i32_0 = arith.constant 0 : i32
    return %arg0, %c0_i32 : i32, i32
  }
  func.func @transform_2(%arg0: i32) -> (i32, i32) {
    %c0_i32 = arith.constant 0 : i32
    %c0_i32_0 = arith.constant 0 : i32
    %c0_i32_1 = arith.constant 0 : i32
    return %c0_i32, %c0_i32_0 : i32, i32
  }
  func.func @transform_3(%arg0: i32) -> (i32, i32) {
    %c0_i32 = arith.constant 0 : i32
    %c0_i32_0 = arith.constant 0 : i32
    %c0_i32_1 = arith.constant 0 : i32
    return %c0_i32, %c0_i32_0 : i32, i32
  }
  func.func @transform_4(%arg0: i32) -> (i32, i32) {
    %c0_i32 = arith.constant 0 : i32
    %c0_i32_0 = arith.constant 0 : i32
    %c0_i32_1 = arith.constant 0 : i32
    return %c0_i32, %c0_i32_0 : i32, i32
  }
  func.func @transform_5(%arg0: i32) -> (i32, i32) {
    %c0_i32 = arith.constant 0 : i32
    %c0_i32_0 = arith.constant 0 : i32
    %c0_i32_1 = arith.constant 0 : i32
    return %c0_i32, %c0_i32_0 : i32, i32
  }
  func.func @transform_6(%arg0: i32) -> (i32, i32) {
    %c0_i32 = arith.constant 0 : i32
    %c0_i32_0 = arith.constant 0 : i32
    %c0_i32_1 = arith.constant 0 : i32
    return %c0_i32, %c0_i32_0 : i32, i32
  }
  func.func @transform_7(%arg0: i32) -> (i32, i32) {
    %c0_i32 = arith.constant 0 : i32
    %c0_i32_0 = arith.constant 0 : i32
    return %arg0, %c0_i32 : i32, i32
  }
}

</mosaic_0001>

<bundles_post_ra>
// kernel: tpu_custom_call.1
= control target key start
LH: loop header
LB: loop body
LE: loop exit
PB: predicated region body
PF: predicated region fallthrough
CT: control target
= control target key end

     0   :  { %12 = vsyncpa [#allocation3], 0  ;;  %s1087_s0 = inlined_call_operand.hbm [shape: f32[16,32], index: 0, kind: input, shape index: {}]   ;;  %s1088_s1 = inlined_call_operand.hbm [shape: f32[16,16], index: 1, kind: input, shape index: {}]   ;;  %s1089_s2 = inlined_call_operand.hbm [shape: f32[32,256], index: 2, kind: input, shape index: {}]   ;;  %s1090_s3 = inlined_call_operand.hbm [shape: f32[16,256], index: 3, kind: input, shape index: {}]   ;;  %s1091_s4 = inlined_call_operand.hbm [shape: f32[256,256], index: 4, kind: input, shape index: {}]   ;;  %s1092_s5 = inlined_call_operand.hbm [shape: f32[128,128], index: 5, kind: input, shape index: {}]   ;;  %s1093_s6 = inlined_call_operand.hbm [shape: f32[16,256], index: 6, kind: input, shape index: {}]   ;;  %s1094_s7 = inlined_call_operand.vmem [shape: f32[16,1], index: 7, kind: output, shape index: {}]  }
   0x1   :  { %13 = vsyncpa [#allocation5], 0 }
   0x2   :  { %14 = vsyncpa [#allocation8], 0 }
   0x3   :  { %15 = vsyncpa [#allocation11], 0  ;;  %s33_s26 = sshll.u32 %s1088_s1, 4  ;;  %s944_s27 = smov [#allocation4]   ;;  %s34_s26 = int_to_ptr.hbm [resolvable:$true] %s33_s26 }
   0x4   :  { %s35_s28 = sshll.u32 %s944_s27, 4  ;;  %s945_s29 = smov 128   ;;  %s36_s28 = int_to_ptr.vmem [resolvable:$true] %s35_s28 }
   0x5   :  { %s946_s30 = smov 8   ;;  %s59_s10 = sshll.u32 %s1090_s3, 4  ;;  %s60_s10 = int_to_ptr.hbm [resolvable:$true] %s59_s10 }
   0x6   :  { %41 = dma.hbm_to_vmem [thread:$0]  %s34_s26, 256, %s36_s28, [#allocation5], %s945_s29, %s945_s29, %s946_s30  }
   0x7   :  { %s947_s11 = smov [#allocation7]   ;;  %s85_s15 = sshll.u32 %s1092_s5, 4  ;;  %s86_s15 = int_to_ptr.hbm [resolvable:$true] %s85_s15 }
   0x8   :  { %s61_s12 = sshll.u32 %s947_s11, 4  ;;  %s948_s1 = smov 256   ;;  %s62_s12 = int_to_ptr.vmem [resolvable:$true] %s61_s12 }
   0x9   :  { %s949_s16 = smov 16   ;;  %s20_s19 = sshll.u32 %s1087_s0, 4  ;;  %s21_s19 = int_to_ptr.hbm [resolvable:$true] %s20_s19 }
   0xa   :  { %67 = dma.hbm_to_vmem [thread:$0]  %s60_s10, 512, %s62_s12, [#allocation8], %s948_s1, %s948_s1, %s949_s16  }
   0xb   :  { %s950_s3 = smov [#allocation10]   ;;  %s951_s21 = smov [#allocation2]  }
   0xc   :  { %s87_s20 = sshll.u32 %s950_s3, 4  ;;  %s22_s22 = sshll.u32 %s951_s21, 4  ;;  %s88_s20 = int_to_ptr.vmem [resolvable:$true] %s87_s20  ;;  %s23_s22 = int_to_ptr.vmem [resolvable:$true] %s22_s22 }
   0xd   :  { %93 = dma.hbm_to_vmem [thread:$0]  %s86_s15, 2048, %s88_s20, [#allocation11], %s945_s29, %s945_s29, %s946_s30  }
   0xe   :  { %s46_s24 = sshll.u32 %s1089_s2, 4  ;;  %s72_s27 = sshll.u32 %s1091_s4, 4  ;;  %s47_s24 = int_to_ptr.hbm [resolvable:$true] %s46_s24  ;;  %s73_s27 = int_to_ptr.hbm [resolvable:$true] %s72_s27 }
   0xf   :  { %28 = dma.hbm_to_vmem [thread:$0]  %s21_s19, 256, %s23_s22, [#allocation3], %s945_s29, %s945_s29, %s946_s30  }
  0x10   :  { %s952_s28 = smov [#allocation6]   ;;  %s953_s8 = smov [#allocation9]  }
  0x11   :  { %s48_s0 = sshll.u32 %s952_s28, 4  ;;  %s74_s9 = sshll.u32 %s953_s8, 4  ;;  %s49_s0 = int_to_ptr.vmem [resolvable:$true] %s48_s0  ;;  %s75_s9 = int_to_ptr.vmem [resolvable:$true] %s74_s9 }
  0x12   :  { %54 = dma.hbm_to_vmem [thread:$0]  %s47_s24, 1024, %s49_s0, [#allocation5], %s948_s1, %s948_s1, %s949_s16  }
  0x13   :  { %s98_s2 = sshll.u32 %s1093_s6, 4  ;;  %s954_s4 = smov [#allocation12]   ;;  %s99_s2 = int_to_ptr.hbm [resolvable:$true] %s98_s2 }
  0x14   :  { %80 = dma.hbm_to_vmem [thread:$0]  %s73_s27, 8192, %s75_s9, [#allocation8], %s948_s1, %s948_s1, %s949_s16  }
  0x15   :  { %s100_s29 = sshll.u32 %s954_s4, 4  ;;  %s101_s29 = int_to_ptr.vmem [resolvable:$true] %s100_s29 }
  0x16   :  { %106 = dma.hbm_to_vmem [thread:$0]  %s99_s2, 512, %s101_s29, [#allocation11], %s948_s1, %s948_s1, %s949_s16  }
  0x17   :  { %936 = dma.done.wait [#allocation3], 256  }
  0x18   :  { %937 = vsyncadd [#allocation3], 4294967040 }
  0x19   :  { %938 = dma.done.wait [#allocation5], 1280  }
  0x1a   :  { %939 = vsyncadd [#allocation5], 4294966016 }
  0x1b   :  { %940 = dma.done.wait [#allocation8], 8704  }
  0x1c   :  { %941 = vsyncadd [#allocation8], 4294958592 }
  0x1d   :  { %942 = dma.done.wait [#allocation11], 2560  }
  0x1e   :  { %943 = vsyncadd [#allocation11], 4294964736  ;;  %v164_v0 = vld [vmem:[#allocation7 + $0x10] sm:$0xff]  ;;  %v165_v1 = vld [vmem:[#allocation7 + $0x18] sm:$0xff]  ;;  %vm166_vm0 = vcmask 130048   ;;  %vm219_vm1 = vcmask 261120  }
  0x1f   :  { %v162_v2 = vld [vmem:[#allocation7] sm:$0xff]  ;;  %187 = vmatpush.msra.mxu2 %v164_v0  ;;  %210 = vmatpush.msra.mxu3 %v165_v1  ;;  %v163_v3 = vld [vmem:[#allocation7 + $0x8] sm:$0xff]  ;;  %v152_v4 = vld [vmem:[#allocation4] sm:$0xff]  ;;  %s955_s6 = smov 64  }
  0x20   :  { %v160_v5 = vld [vmem:[#allocation6 + $0x30] sm:$0xff]  ;;  %v161_v6 = vld [vmem:[#allocation6 + $0x38] sm:$0xff]  ;;  %v158_v7 = vld [vmem:[#allocation6 + $0x20] sm:$0xff] }
  0x21   :  { %188 = vmatpush.msra.mxu2 %v162_v2  ;;  %211 = vmatpush.msra.mxu3 %v163_v3  ;;  %v159_v8 = vld [vmem:[#allocation6 + $0x28] sm:$0xff]  ;;  %v156_v9 = vld [vmem:[#allocation6 + $0x10] sm:$0xff]  ;;  %v157_v10 = vld [vmem:[#allocation6 + $0x18] sm:$0xff] }
  0x22   :  { %720 = vmatmul.msk.f32.vlgmr.msra.gmra.mxu2 %vm166_vm0, %v152_v4  ;;  %722 = vmatmul.msk.f32.vlgmr.msra.gmra.mxu3 %vm166_vm0, %v152_v4  ;;  %v154_v11 = vld [vmem:[#allocation6] sm:$0xff]  ;;  %v155_v12 = vld [vmem:[#allocation6 + $0x8] sm:$0xff]  ;;  %v153_v13 = vld [vmem:[#allocation4 + $0x8] sm:$0xff] }
  0x23   :  { %238 = vmatpush.msrb.mxu2 %v160_v5  ;;  %261 = vmatpush.msrb.mxu3 %v161_v6  ;;  %v150_v14 = vld [vmem:[#allocation2] sm:$0xff]  ;;  %v151_v15 = vld [vmem:[#allocation2 + $0x8] sm:$0xff]  ;;  %v397_v43 = vld [vmem:[#allocation9 + $0xf0] sm:$0xff] }
  0x24   :  { %v135_v20 = vld [vmem:[#allocation12] ss:$8 sm:$0x3]  ;;  %v429_v44 = vld [vmem:[#allocation9 + $0x1f0] sm:$0xff]  ;;  %v398_v45 = vld [vmem:[#allocation9 + $0xf8] sm:$0xff]  ;;  %431 = vmatpush.msra.mxu0 %v397_v43 }
  0x25   :  { %239 = vmatpush.msrb.mxu2 %v158_v7  ;;  %262 = vmatpush.msrb.mxu3 %v159_v8  ;;  %v273_v21 = vperm.slane %v135_v20, 0  ;;  %v274_v22 = vperm.slane %v135_v20, 1  ;;  %v430_v46 = vld [vmem:[#allocation9 + $0x1f8] sm:$0xff]  ;;  %v395_v47 = vld [vmem:[#allocation9 + $0xe0] sm:$0xff]  ;;  %v396_v49 = vld [vmem:[#allocation9 + $0xe8] sm:$0xff] }
  0x26   :  { %454 = vmatpush.msra.mxu1 %v429_v44  ;;  %v427_v48 = vld [vmem:[#allocation9 + $0x1e0] sm:$0xff]  ;;  %432 = vmatpush.msra.mxu0 %v395_v47  ;;  %v428_v50 = vld [vmem:[#allocation9 + $0x1e8] sm:$0xff]  ;;  %v393_v51 = vld [vmem:[#allocation9 + $0xd0] sm:$0xff] }
  0x27   :  { %240 = vmatpush.msrb.mxu2 %v156_v9  ;;  %263 = vmatpush.msrb.mxu3 %v157_v10  ;;  %v425_v52 = vld [vmem:[#allocation9 + $0x1d0] sm:$0xff]  ;;  %v394_v53 = vld [vmem:[#allocation9 + $0xd8] sm:$0xff]  ;;  %v391_v55 = vld [vmem:[#allocation9 + $0xc0] sm:$0xff] }
  0x28   :  { %455 = vmatpush.msra.mxu1 %v427_v48  ;;  %433 = vmatpush.msra.mxu0 %v393_v51  ;;  %v426_v54 = vld [vmem:[#allocation9 + $0x1d8] sm:$0xff]  ;;  %v423_v56 = vld [vmem:[#allocation9 + $0x1c0] sm:$0xff]  ;;  %v392_v57 = vld [vmem:[#allocation9 + $0xc8] sm:$0xff] }
  0x29   :  { %241 = vmatpush.msrb.mxu2 %v154_v11  ;;  %264 = vmatpush.msrb.mxu3 %v155_v12  ;;  %v424_v58 = vld [vmem:[#allocation9 + $0x1c8] sm:$0xff]  ;;  %v389_v59 = vld [vmem:[#allocation9 + $0xb0] sm:$0xff]  ;;  %v390_v61 = vld [vmem:[#allocation9 + $0xb8] sm:$0xff] }
  0x2a   :  { %721 = vmatmul.msk.f32.gmra.mxu2 %vm166_vm0, %v153_v13  ;;  %723 = vmatmul.msk.f32.gmra.mxu3 %vm166_vm0, %v153_v13  ;;  %v421_v60 = vld [vmem:[#allocation9 + $0x1b0] sm:$0xff]  ;;  %v422_v62 = vld [vmem:[#allocation9 + $0x1b8] sm:$0xff]  ;;  %v387_v63 = vld [vmem:[#allocation9 + $0xa0] sm:$0xff] }
  0x2b   :  { %477 = vmatpush.msra.mxu2 %v398_v45  ;;  %500 = vmatpush.msra.mxu3 %v430_v46  ;;  %v419_v0 = vld [vmem:[#allocation9 + $0x1a0] sm:$0xff]  ;;  %v388_v1 = vld [vmem:[#allocation9 + $0xa8] sm:$0xff]  ;;  %v385_v3 = vld [vmem:[#allocation9 + $0x90] sm:$0xff] }
  0x2c   :  { %456 = vmatpush.msra.mxu1 %v425_v52  ;;  %434 = vmatpush.msra.mxu0 %v391_v55  ;;  %v420_v2 = vld [vmem:[#allocation9 + $0x1a8] sm:$0xff]  ;;  %v417_v4 = vld [vmem:[#allocation9 + $0x190] sm:$0xff]  ;;  %v386_v5 = vld [vmem:[#allocation9 + $0x98] sm:$0xff] }
  0x2d   :  { %478 = vmatpush.msra.mxu2 %v396_v49  ;;  %501 = vmatpush.msra.mxu3 %v428_v50  ;;  %v418_v6 = vld [vmem:[#allocation9 + $0x198] sm:$0xff]  ;;  %v383_v7 = vld [vmem:[#allocation9 + $0x80] sm:$0xff]  ;;  %v384_v9 = vld [vmem:[#allocation9 + $0x88] sm:$0xff] }
  0x2e   :  { %457 = vmatpush.msra.mxu1 %v423_v56  ;;  %435 = vmatpush.msra.mxu0 %v389_v59  ;;  %v415_v8 = vld [vmem:[#allocation9 + $0x180] sm:$0xff]  ;;  %v416_v10 = vld [vmem:[#allocation9 + $0x188] sm:$0xff]  ;;  %v381_v11 = vld [vmem:[#allocation9 + $0x70] sm:$0xff] }
  0x2f   :  { %479 = vmatpush.msra.mxu2 %v394_v53  ;;  %502 = vmatpush.msra.mxu3 %v426_v54  ;;  %v413_v12 = vld [vmem:[#allocation9 + $0x170] sm:$0xff]  ;;  %v382_v13 = vld [vmem:[#allocation9 + $0x78] sm:$0xff]  ;;  %v367_v49 = vld [vmem:[#allocation9] sm:$0xff] }
  0x30   :  { %458 = vmatpush.msra.mxu1 %v421_v60  ;;  %436 = vmatpush.msra.mxu0 %v387_v63  ;;  %v377_v20 = vld [vmem:[#allocation9 + $0x50] sm:$0xff]  ;;  %v370_v45 = vld [vmem:[#allocation9 + $0x18] sm:$0xff]  ;;  %v399_v50 = vld [vmem:[#allocation9 + $0x100] sm:$0xff] }
  0x31   :  { %480 = vmatpush.msra.mxu2 %v392_v57  ;;  %503 = vmatpush.msra.mxu3 %v424_v58  ;;  %v369_v43 = vld [vmem:[#allocation9 + $0x10] sm:$0xff]  ;;  %v402_v48 = vld [vmem:[#allocation9 + $0x118] sm:$0xff]  ;;  %v368_v51 = vld [vmem:[#allocation9 + $0x8] sm:$0xff] }
  0x32   :  { %724 = vmatmul.msk.f32.vlgmr.msrb.gmra.mxu2 %vm219_vm1, %v150_v14  ;;  %726 = vmatmul.msk.f32.vlgmr.msrb.gmra.mxu3 %vm219_vm1, %v150_v14  ;;  %v414_v14 = vld [vmem:[#allocation9 + $0x178] sm:$0xff]  ;;  %v401_v44 = vld [vmem:[#allocation9 + $0x110] sm:$0xff]  ;;  %v400_v52 = vld [vmem:[#allocation9 + $0x108] sm:$0xff] }
  0x33   :  { %481 = vmatpush.msra.mxu2 %v390_v61  ;;  %504 = vmatpush.msra.mxu3 %v422_v62 }
  0x34   :  { %459 = vmatpush.msra.mxu1 %v419_v0  ;;  %437 = vmatpush.msra.mxu0 %v385_v3 }
  0x35   :  { %482 = vmatpush.msra.mxu2 %v388_v1  ;;  %505 = vmatpush.msra.mxu3 %v420_v2 }
  0x36   :  { %460 = vmatpush.msra.mxu1 %v417_v4  ;;  %438 = vmatpush.msra.mxu0 %v383_v7  ;;  %v137_v4 = vld [vmem:[#allocation12 + $0x1] ss:$8 sm:$0x3] }
  0x37   :  { %483 = vmatpush.msra.mxu2 %v386_v5  ;;  %506 = vmatpush.msra.mxu3 %v418_v6 }
  0x38   :  { %461 = vmatpush.msra.mxu1 %v415_v8  ;;  %439 = vmatpush.msra.mxu0 %v381_v11  ;;  %v139_v8 = vld [vmem:[#allocation12 + $0x2] ss:$8 sm:$0x3]  ;;  %v338_v11 = vperm.slane %v137_v4, 0 }
  0x39   :  { %484 = vmatpush.msra.mxu2 %v384_v9  ;;  %507 = vmatpush.msra.mxu3 %v416_v10 }
  0x3a   :  { %725 = vmatmul.msk.f32.gmra.mxu2 %vm219_vm1, %v151_v15  ;;  %727 = vmatmul.msk.f32.gmra.mxu3 %vm219_vm1, %v151_v15  ;;  %v379_v15 = vld [vmem:[#allocation9 + $0x60] sm:$0xff] }
  0x3b   :  { %462 = vmatpush.msra.mxu1 %v413_v12  ;;  %485 = vmatpush.msra.mxu2 %v382_v13  ;;  %v339_v12 = vperm.slane %v137_v4, 1 }
  0x3c   :  { %508 = vmatpush.msra.mxu3 %v414_v14  ;;  %440 = vmatpush.msra.mxu0 %v379_v15 }
  0x3e   :  { %441 = vmatpush.msra.mxu0 %v377_v20 }
  0xa5   :  { %v190_v16 = vpop.f32.mrf.mxu2  ;;  %v213_v17 = vpop.f32.mrf.mxu3 }
  0xad   :  { %v193_v18 = vpop.f32.mrf.mxu2  ;;  %v216_v19 = vpop.f32.mrf.mxu3 }
  0xb5   :  { %v243_v23 = vpop.f32.mrf.mxu2  ;;  %v266_v24 = vpop.f32.mrf.mxu3 }
  0xb6   :  { %v244_v25 = vadd.f32 %v243_v23, %v190_v16  ;;  %v267_v26 = vadd.f32 %v266_v24, %v213_v17  ;;  %v411_v16 = vld [vmem:[#allocation9 + $0x160] sm:$0xff]  ;;  %v380_v17 = vld [vmem:[#allocation9 + $0x68] sm:$0xff]  ;;  %v410_v23 = vld [vmem:[#allocation9 + $0x158] sm:$0xff] }
  0xb7   :  { %463 = vmatpush.msra.mxu1 %v411_v16  ;;  %486 = vmatpush.msra.mxu2 %v380_v17  ;;  %v375_v24 = vld [vmem:[#allocation9 + $0x40] sm:$0xff]  ;;  %v347_v16 = vperm.slane %v139_v8, 0 }
  0xb8   :  { %v1033_v27 = vadd.f32 %v273_v21, %v244_v25  ;;  %v1035_v28 = vadd.f32 %v274_v22, %v267_v26  ;;  %v407_v25 = vld [vmem:[#allocation9 + $0x140] sm:$0xff]  ;;  %v376_v26 = vld [vmem:[#allocation9 + $0x48] sm:$0xff]  ;;  %442 = vmatpush.msra.mxu0 %v375_v24 }
  0xba   :  { %v281_v29 = vadd.f32 %v1035_v28, %v1033_v27  ;;  %v289_v34 = vmul.f32 %v1033_v27, %v1033_v27  ;;  %v290_v35 = vmul.f32 %v1035_v28, %v1035_v28 }
  0xbc   :  { %282 = vadd.xlane.f32.xlu0 %v281_v29  ;;  %v293_v39 = vadd.f32 %v290_v35, %v289_v34  ;;  %v408_v29 = vld [vmem:[#allocation9 + $0x148] sm:$0xff]  ;;  %v406_v34 = vld [vmem:[#allocation9 + $0x138] sm:$0xff]  ;;  %v371_v35 = vld [vmem:[#allocation9 + $0x20] sm:$0xff] }
  0xbd   :  { %v246_v30 = vpop.f32.mrf.mxu2  ;;  %v269_v31 = vpop.f32.mrf.mxu3 }
  0xbe   :  { %v247_v32 = vadd.f32 %v246_v30, %v193_v18  ;;  %v270_v33 = vadd.f32 %v269_v31, %v216_v19  ;;  %v412_v18 = vld [vmem:[#allocation9 + $0x168] sm:$0xff]  ;;  %v373_v30 = vld [vmem:[#allocation9 + $0x30] sm:$0xff] }
  0xbf   :  { %509 = vmatpush.msra.mxu3 %v412_v18  ;;  %v405_v31 = vld [vmem:[#allocation9 + $0x130] sm:$0xff]  ;;  %443 = vmatpush.msra.mxu0 %v373_v30  ;;  %v348_v18 = vperm.slane %v139_v8, 1 }
  0xc0   :  { %v1043_v36 = vadd.f32 %v273_v21, %v247_v32  ;;  %v1045_v37 = vadd.f32 %v274_v22, %v270_v33  ;;  %v409_v21 = vld [vmem:[#allocation9 + $0x150] sm:$0xff]  ;;  %v378_v22 = vld [vmem:[#allocation9 + $0x58] sm:$0xff] }
  0xc1   :  { %464 = vmatpush.msra.mxu1 %v409_v21  ;;  %487 = vmatpush.msra.mxu2 %v378_v22  ;;  %v374_v32 = vld [vmem:[#allocation9 + $0x38] sm:$0xff] }
  0xc2   :  { %v284_v38 = vadd.f32 %v1045_v37, %v1043_v36  ;;  %v291_v40 = vmul.f32 %v1043_v36, %v1043_v36  ;;  %v292_v41 = vmul.f32 %v1045_v37, %v1045_v37  ;;  %510 = vmatpush.msra.mxu3 %v410_v23  ;;  %444 = vmatpush.msra.mxu0 %v371_v35 }
  0xc3   :  { %465 = vmatpush.msra.mxu1 %v407_v25  ;;  %488 = vmatpush.msra.mxu2 %v376_v26 }
  0xc4   :  { %285 = vadd.xlane.f32.xlu1 %v284_v38  ;;  %294 = vadd.xlane.f32.xlu0 %v293_v39  ;;  %v296_v42 = vadd.f32 %v292_v41, %v291_v40  ;;  %v403_v38 = vld [vmem:[#allocation9 + $0x120] sm:$0xff]  ;;  %v372_v39 = vld [vmem:[#allocation9 + $0x28] sm:$0xff] }
  0xc5   :  { %511 = vmatpush.msra.mxu3 %v408_v29  ;;  %466 = vmatpush.msra.mxu1 %v405_v31  ;;  %v404_v40 = vld [vmem:[#allocation9 + $0x128] sm:$0xff] }
  0xc6   :  { %489 = vmatpush.msra.mxu2 %v374_v32  ;;  %445 = vmatpush.msra.mxu0 %v369_v43 }
  0xc7   :  { %512 = vmatpush.msra.mxu3 %v406_v34  ;;  %467 = vmatpush.msra.mxu1 %v403_v38 }
  0xc8   :  { %490 = vmatpush.msra.mxu2 %v372_v39  ;;  %446 = vmatpush.msra.mxu0 %v367_v49 }
  0xc9   :  { %513 = vmatpush.msra.mxu3 %v404_v40  ;;  %468 = vmatpush.msra.mxu1 %v401_v44  ;;  %v140_v44 = vld [vmem:[#allocation12 + $0x3] ss:$0 sm:$0xff] }
  0xca   :  { %491 = vmatpush.msra.mxu2 %v370_v45 }
  0xcb   :  { %514 = vmatpush.msra.mxu3 %v402_v48  ;;  %469 = vmatpush.msra.mxu1 %v399_v50 }
  0xcc   :  { %297 = vadd.xlane.f32.xlu1 %v296_v42  ;;  %492 = vmatpush.msra.mxu2 %v368_v51 }
  0xcd   :  { %515 = vmatpush.msra.mxu3 %v400_v52 }
 0x12f   :  { %v283_v19 = vpop.xlane.xlu0 %282 }
 0x130   :  { %v1053_v33 = vmul.f32 0.00390625, %v283_v19 }
 0x132   :  { %v301_v46 = vmul.f32 %v1053_v33, %v1053_v33  ;;  %v307_v9 = vsub.f32 %v1033_v27, %v1053_v33  ;;  %v308_v10 = vsub.f32 %v1035_v28, %v1053_v33 }
 0x137   :  { %v286_v41 = vpop.xlane.xlu1 %285  ;;  %v295_v42 = vpop.xlane.xlu0 %294 }
 0x138   :  { %v299_v47 = vmul.f32 0.00390625, %v295_v42  ;;  %v288_v54 = vmul.f32 0.00390625, %v286_v41 }
 0x13a   :  { %v303_v53 = vsub.f32 %v299_v47, %v301_v46  ;;  %v302_v58 = vmul.f32 %v288_v54, %v288_v54  ;;  %v309_v27 = vsub.f32 %v1043_v36, %v288_v54  ;;  %v310_v28 = vsub.f32 %v1045_v37, %v288_v54  ;;  %v600_v54 = vld [vmem:[#allocation10 + $0x78] sm:$0xff] }
 0x13b   :  { %601 = vmatpush.msrb.mxu0 %v600_v54  ;;  %728 = vmatpush.msrb.mxu1 %v600_v54 }
 0x13c   :  { %v305_v55 = vmax.f32 %v303_v53, 0.0 }
 0x13e   :  { %v311_v56 = vadd.f32 1e-05, %v305_v55  ;;  %v599_v55 = vld [vmem:[#allocation10 + $0x70] sm:$0xff] }
 0x13f   :  { %v298_v57 = vpop.xlane.xlu1 %297  ;;  %602 = vmatpush.msrb.mxu0 %v599_v55  ;;  %729 = vmatpush.msrb.mxu1 %v599_v55 }
 0x140   :  { %756 = vrsqrt.f32 %v311_v56  ;;  %v300_v59 = vmul.f32 0.00390625, %v298_v57  ;;  %vm319_vm3 = vweird.f32 %v311_v56  ;;  %v597_v57 = vld [vmem:[#allocation10 + $0x60] sm:$0xff] }
 0x142   :  { %v304_v60 = vsub.f32 %v300_v59, %v302_v58  ;;  %v596_v58 = vld [vmem:[#allocation10 + $0x58] sm:$0xff]  ;;  %v595_v59 = vld [vmem:[#allocation10 + $0x50] sm:$0xff] }
 0x144   :  { %v306_v61 = vmax.f32 %v304_v60, 0.0  ;;  %v594_v60 = vld [vmem:[#allocation10 + $0x48] sm:$0xff] }
 0x146   :  { %v757_v62 = vpop.eup %756  ;;  %v312_v63 = vadd.f32 1e-05, %v306_v61  ;;  %v593_v61 = vld [vmem:[#allocation10 + $0x40] sm:$0xff] }
 0x147   :  { %v314_v0 = vmul.f32 %v757_v62, %v311_v56  ;;  %vm320_vm2 = vweird.f32 %v757_v62  ;;  %v598_v56 = vld [vmem:[#allocation10 + $0x68] sm:$0xff] }
 0x148   :  { %758 = vrsqrt.f32 %v312_v63  ;;  %vm321_vm4 = vmor %vm319_vm3, %vm320_vm2  ;;  %vm329_vm6 = vweird.f32 %v312_v63  ;;  %603 = vmatpush.msrb.mxu0 %v598_v56  ;;  %730 = vmatpush.msrb.mxu1 %v598_v56 }
 0x149   :  { %v315_v1 = vmul.f32 %v757_v62, %v314_v0  ;;  %v590_v0 = vld [vmem:[#allocation10 + $0x28] sm:$0xff] }
 0x14a   :  { %604 = vmatpush.msrb.mxu0 %v597_v57  ;;  %731 = vmatpush.msrb.mxu1 %v597_v57 }
 0x14b   :  { %v316_v2 = vmul.f32 0.5, %v315_v1 }
 0x14c   :  { %605 = vmatpush.msrb.mxu0 %v596_v58  ;;  %732 = vmatpush.msrb.mxu1 %v596_v58 }
 0x14d   :  { %v317_v3 = vsub.f32 1.5, %v316_v2 }
 0x14e   :  { %v759_v5 = vpop.eup %758  ;;  %606 = vmatpush.msrb.mxu0 %v595_v59  ;;  %733 = vmatpush.msrb.mxu1 %v595_v59 }
 0x14f   :  { %v318_v6 = vmul.f32 %v757_v62, %v317_v3  ;;  %v324_v7 = vmul.f32 %v759_v5, %v312_v63  ;;  %vm330_vm5 = vweird.f32 %v759_v5  ;;  %v591_v63 = vld [vmem:[#allocation10 + $0x30] sm:$0xff]  ;;  %v589_v3 = vld [vmem:[#allocation10 + $0x20] sm:$0xff] }
 0x150   :  { %vm331_vm7 = vmor %vm329_vm6, %vm330_vm5  ;;  %607 = vmatpush.msrb.mxu0 %v594_v60  ;;  %734 = vmatpush.msrb.mxu1 %v594_v60 }
 0x151   :  { %v325_v13 = vmul.f32 %v759_v5, %v324_v7  ;;  %v322_v14 = vsel %vm321_vm4, %v757_v62, %v318_v6  ;;  %v592_v62 = vld [vmem:[#allocation10 + $0x38] sm:$0xff]  ;;  %vm626_vm4 = vcmask 523264  }
 0x152   :  { %v333_v15 = vmul.f32 %v322_v14, %v307_v9  ;;  %v334_v17 = vmul.f32 %v322_v14, %v308_v10  ;;  %608 = vmatpush.msrb.mxu0 %v593_v61  ;;  %735 = vmatpush.msrb.mxu1 %v593_v61  ;;  %v588_v7 = vld [vmem:[#allocation10 + $0x18] sm:$0xff]  ;;  %v587_v9 = vld [vmem:[#allocation10 + $0x10] sm:$0xff]  ;;  %v586_v10 = vld [vmem:[#allocation10 + $0x8] sm:$0xff] }
 0x153   :  { %v326_v19 = vmul.f32 0.5, %v325_v13 }
 0x154   :  { %v342_v20 = vmul.f32 %v338_v11, %v333_v15  ;;  %v343_v21 = vmul.f32 %v339_v12, %v334_v17  ;;  %609 = vmatpush.msrb.mxu0 %v592_v62  ;;  %736 = vmatpush.msrb.mxu1 %v592_v62 }
 0x155   :  { %v327_v22 = vsub.f32 1.5, %v326_v19 }
 0x156   :  { %v351_v23 = vadd.f32 %v347_v16, %v342_v20  ;;  %v352_v24 = vadd.f32 %v348_v18, %v343_v21  ;;  %610 = vmatpush.msrb.mxu0 %v591_v63  ;;  %737 = vmatpush.msrb.mxu1 %v591_v63 }
 0x157   :  { %v328_v25 = vmul.f32 %v759_v5, %v327_v22 }
 0x158   :  { %vm355_vm8 = vcmp.gt.f32.partialorder %v351_v23, 0.0  ;;  %v359_v26 = vmul.f32 0.01, %v351_v23  ;;  %vm356_vm9 = vcmp.gt.f32.partialorder %v352_v24, 0.0  ;;  %v360_v29 = vmul.f32 0.01, %v352_v24  ;;  %611 = vmatpush.msrb.mxu0 %v590_v0  ;;  %738 = vmatpush.msrb.mxu1 %v590_v0 }
 0x159   :  { %v332_v30 = vsel %vm331_vm7, %v759_v5, %v328_v25 }
 0x15a   :  { %v363_v31 = vsel %vm355_vm8, %v351_v23, %v359_v26  ;;  %v364_v32 = vsel %vm356_vm9, %v352_v24, %v360_v29  ;;  %v335_v33 = vmul.f32 %v332_v30, %v309_v27  ;;  %v336_v34 = vmul.f32 %v332_v30, %v310_v28  ;;  %612 = vmatpush.msrb.mxu0 %v589_v3 }
 0x15b   :  { %447 = vmatmul.f32.vlgmr.msra.gmra.mxu0 %v363_v31  ;;  %470 = vmatmul.f32.vlgmr.msra.gmra.mxu1 %v364_v32 }
 0x15c   :  { %493 = vmatmul.f32.vlgmr.msra.gmra.mxu2 %v363_v31  ;;  %516 = vmatmul.f32.vlgmr.msra.gmra.mxu3 %v364_v32  ;;  %v344_v35 = vmul.f32 %v338_v11, %v335_v33  ;;  %v345_v36 = vmul.f32 %v339_v12, %v336_v34  ;;  %v585_v12 = vld [vmem:[#allocation10] sm:$0xff] }
 0x15d   :  { %739 = vmatpush.msrb.mxu1 %v589_v3  ;;  %613 = vmatpush.msrb.mxu0 %v588_v7  ;;  %v141_v32 = vld [vmem:[#allocation12 + $0x4] ss:$0 sm:$0xff] }
 0x15e   :  { %v353_v38 = vadd.f32 %v347_v16, %v344_v35  ;;  %v354_v37 = vadd.f32 %v348_v18, %v345_v36  ;;  %v142_v35 = vld [vmem:[#allocation12 + $0x5] ss:$0 sm:$0xff] }
 0x15f   :  { %740 = vmatpush.msrb.mxu1 %v588_v7  ;;  %614 = vmatpush.msrb.mxu0 %v587_v9 }
 0x160   :  { %vm357_vm10 = vcmp.gt.f32.partialorder %v353_v38, 0.0  ;;  %v361_v39 = vmul.f32 0.01, %v353_v38  ;;  %vm358_vm11 = vcmp.gt.f32.partialorder %v354_v37, 0.0  ;;  %v362_v40 = vmul.f32 0.01, %v354_v37 }
 0x161   :  { %741 = vmatpush.msrb.mxu1 %v587_v9  ;;  %615 = vmatpush.msrb.mxu0 %v586_v10 }
 0x162   :  { %v365_v41 = vsel %vm357_vm10, %v353_v38, %v361_v39  ;;  %v366_v42 = vsel %vm358_vm11, %v354_v37, %v362_v40 }
 0x163   :  { %450 = vmatmul.f32.gmra.mxu0 %v365_v41  ;;  %473 = vmatmul.f32.gmra.mxu1 %v366_v42 }
 0x164   :  { %496 = vmatmul.f32.gmra.mxu2 %v365_v41  ;;  %519 = vmatmul.f32.gmra.mxu3 %v366_v42 }
 0x165   :  { %742 = vmatpush.msrb.mxu1 %v586_v10  ;;  %616 = vmatpush.msrb.mxu0 %v585_v12 }
 0x167   :  { %743 = vmatpush.msrb.mxu1 %v585_v12 }
 0x1d8   :  { %v448_v43 = vpop.f32.mrf.mxu0  ;;  %v471_v45 = vpop.f32.mrf.mxu1 }
 0x1d9   :  { %v472_v46 = vadd.f32 %v471_v45, %v448_v43 }
 0x1db   :  { %v1063_v47 = vadd.f32 %v472_v46, %v140_v44 }
 0x1dd   :  { %525 = vadd.xlane.f32.xlu2 %v1063_v47  ;;  %v531_v48 = vmul.f32 %v1063_v47, %v1063_v47 }
 0x1df   :  { %533 = vadd.xlane.f32.xlu0 %v531_v48  ;;  %v494_v37 = vpop.f32.mrf.mxu2  ;;  %v517_v39 = vpop.f32.mrf.mxu3 }
 0x1e0   :  { %v451_v49 = vpop.f32.mrf.mxu0  ;;  %v474_v50 = vpop.f32.mrf.mxu1 }
 0x1e1   :  { %v475_v51 = vadd.f32 %v474_v50, %v451_v49 }
 0x1e3   :  { %v1068_v52 = vadd.f32 %v475_v51, %v140_v44  ;;  %v518_v44 = vadd.f32 %v517_v39, %v494_v37 }
 0x1e5   :  { %527 = vadd.xlane.f32.xlu2 %v1068_v52  ;;  %v532_v53 = vmul.f32 %v1068_v52, %v1068_v52 }
 0x1e7   :  { %535 = vadd.xlane.f32.xlu1 %v532_v53  ;;  %v497_v54 = vpop.f32.mrf.mxu2  ;;  %v520_v55 = vpop.f32.mrf.mxu3 }
 0x1e8   :  { %v521_v58 = vadd.f32 %v520_v55, %v497_v54 }
 0x250   :  { %v526_v1 = vpop.xlane.xlu2 %525 }
 0x251   :  { %v529_v2 = vmul.f32 0.0078125, %v526_v1 }
 0x252   :  { %v534_v4 = vpop.xlane.xlu0 %533 }
 0x253   :  { %v539_v5 = vmul.f32 %v529_v2, %v529_v2  ;;  %v537_v6 = vmul.f32 0.0078125, %v534_v4  ;;  %v545_v29 = vsub.f32 %v1063_v47, %v529_v2  ;;  %v143_v47 = vld [vmem:[#allocation12 + $0x6] ss:$0 sm:$0xff] }
 0x255   :  { %v541_v8 = vsub.f32 %v537_v6, %v539_v5 }
 0x257   :  { %v543_v11 = vmax.f32 %v541_v8, 0.0 }
 0x258   :  { %v528_v13 = vpop.xlane.xlu2 %527 }
 0x259   :  { %v547_v14 = vadd.f32 1e-05, %v543_v11  ;;  %v530_v15 = vmul.f32 0.0078125, %v528_v13 }
 0x25a   :  { %v536_v16 = vpop.xlane.xlu1 %535 }
 0x25b   :  { %760 = vrsqrt.f32 %v547_v14  ;;  %v540_v17 = vmul.f32 %v530_v15, %v530_v15  ;;  %v538_v18 = vmul.f32 0.0078125, %v536_v16  ;;  %vm555_vm13 = vweird.f32 %v547_v14 }
 0x25c   :  { %v546_v45 = vsub.f32 %v1068_v52, %v530_v15  ;;  %v144_v52 = vld [vmem:[#allocation12 + $0x7] ss:$0 sm:$0xff] }
 0x25d   :  { %v542_v19 = vsub.f32 %v538_v18, %v540_v17 }
 0x25f   :  { %v544_v20 = vmax.f32 %v542_v19, 0.0 }
 0x261   :  { %v761_v21 = vpop.eup %760  ;;  %v548_v23 = vadd.f32 1e-05, %v544_v20 }
 0x262   :  { %v550_v22 = vmul.f32 %v761_v21, %v547_v14  ;;  %vm556_vm12 = vweird.f32 %v761_v21 }
 0x263   :  { %762 = vrsqrt.f32 %v548_v23  ;;  %vm557_vm14 = vmor %vm555_vm13, %vm556_vm12  ;;  %vm565_vm0 = vweird.f32 %v548_v23  ;;  %vm709_vm13 = vcmask 7168  }
 0x264   :  { %v551_v24 = vmul.f32 %v761_v21, %v550_v22 }
 0x266   :  { %v552_v27 = vmul.f32 0.5, %v551_v24 }
 0x268   :  { %v553_v28 = vsub.f32 1.5, %v552_v27 }
 0x269   :  { %v763_v25 = vpop.eup %762 }
 0x26a   :  { %v554_v26 = vmul.f32 %v761_v21, %v553_v28  ;;  %v560_v30 = vmul.f32 %v763_v25, %v548_v23  ;;  %vm566_vm15 = vweird.f32 %v763_v25 }
 0x26b   :  { %vm567_vm2 = vmor %vm565_vm0, %vm566_vm15 }
 0x26c   :  { %v558_v31 = vsel %vm557_vm14, %v761_v21, %v554_v26  ;;  %v561_v34 = vmul.f32 %v763_v25, %v560_v30 }
 0x26d   :  { %v569_v33 = vmul.f32 %v558_v31, %v545_v29 }
 0x26e   :  { %v562_v36 = vmul.f32 0.5, %v561_v34 }
 0x26f   :  { %v571_v38 = vmul.f32 %v569_v33, %v141_v32  ;;  %v145_v33 = vld [vmem:[#allocation12 + $0x10] ss:$0 sm:$0xff] }
 0x270   :  { %v563_v40 = vsub.f32 1.5, %v562_v36 }
 0x271   :  { %v573_v41 = vadd.f32 %v571_v38, %v142_v35  ;;  %v146_v38 = vld [vmem:[#allocation12 + $0x11] ss:$0 sm:$0xff] }
 0x272   :  { %v564_v42 = vmul.f32 %v763_v25, %v563_v40 }
 0x273   :  { %vm575_vm1 = vcmp.gt.f32.partialorder %v573_v41, 0.0  ;;  %v577_v43 = vmul.f32 0.01, %v573_v41 }
 0x274   :  { %v568_v46 = vsel %vm567_vm2, %v763_v25, %v564_v42 }
 0x275   :  { %v579_v48 = vsel %vm575_vm1, %v573_v41, %v577_v43  ;;  %v570_v49 = vmul.f32 %v568_v46, %v546_v45  ;;  %v147_v45 = vld [vmem:[#allocation12 + $0x12] ss:$0 sm:$0xff] }
 0x276   :  { %v581_v50 = vadd.f32 %v579_v48, %v518_v44 }
 0x277   :  { %v572_v53 = vmul.f32 %v570_v49, %v141_v32 }
 0x278   :  { %v583_v51 = vadd.f32 %v581_v50, %v143_v47 }
 0x279   :  { %v574_v56 = vadd.f32 %v572_v53, %v142_v35 }
 0x27a   :  { %617 = vmatmul.f32.vlgmr.msrb.gmra.mxu0 %v583_v51  ;;  %v148_v51 = vld [vmem:[#allocation12 + $0x13] ss:$0 sm:$0xff] }
 0x27b   :  { %vm576_vm3 = vcmp.gt.f32.partialorder %v574_v56, 0.0  ;;  %v578_v57 = vmul.f32 0.01, %v574_v56 }
 0x27d   :  { %v580_v59 = vsel %vm576_vm3, %v574_v56, %v578_v57 }
 0x27e   :  { %v582_v60 = vadd.f32 %v580_v59, %v521_v58 }
 0x280   :  { %v584_v61 = vadd.f32 %v582_v60, %v143_v47 }
 0x282   :  { %620 = vmatmul.f32.vlgmr.msrb.gmra.mxu1 %v584_v61 }
 0x2f7   :  { %v618_v62 = vpop.f32.mrf.mxu0 }
 0x2f8   :  { %v624_v63 = vadd.f32 %v618_v62, %v144_v52 }
 0x2fa   :  { %v627_v0 = vsel %vm626_vm4, %v624_v63, 0.0  ;;  %v635_v1 = vmul.f32 %v624_v63, %v624_v63 }
 0x2fb   :  { %628 = vadd.xlane.f32.xlu2 %v627_v0  ;;  %v149_v0 = vld [vmem:[#allocation12 + $0x14] ss:$0 sm:$0xff] }
 0x2fc   :  { %v637_v2 = vsel %vm626_vm4, %v635_v1, 0.0 }
 0x2fd   :  { %638 = vadd.xlane.f32.xlu1 %v637_v2 }
 0x2ff   :  { %v621_v3 = vpop.f32.mrf.mxu1 }
 0x300   :  { %v625_v4 = vadd.f32 %v621_v3, %v144_v52 }
 0x302   :  { %v630_v5 = vsel %vm626_vm4, %v625_v4, 0.0  ;;  %v636_v6 = vmul.f32 %v625_v4, %v625_v4 }
 0x303   :  { %631 = vadd.xlane.f32.xlu0 %v630_v5 }
 0x304   :  { %v640_v7 = vsel %vm626_vm4, %v636_v6, 0.0 }
 0x305   :  { %641 = vadd.xlane.f32.xlu2 %v640_v7 }
 0x316   :  { %691 = vrot.lane.b32.xlu1 %v621_v3, %s955_s6 }
 0x317   :  { %689 = vrot.lane.b32.xlu0 %v618_v62, %s955_s6 }
 0x36e   :  { %v629_v8 = vpop.xlane.xlu2 %628 }
 0x36f   :  { %v633_v9 = vmul.f32 0.015625, %v629_v8 }
 0x370   :  { %v639_v10 = vpop.xlane.xlu1 %638 }
 0x371   :  { %v645_v11 = vmul.f32 %v633_v9, %v633_v9  ;;  %v643_v12 = vmul.f32 0.015625, %v639_v10  ;;  %v651_v31 = vsub.f32 %v624_v63, %v633_v9 }
 0x373   :  { %v647_v13 = vsub.f32 %v643_v12, %v645_v11 }
 0x375   :  { %v649_v14 = vmax.f32 %v647_v13, 0.0 }
 0x376   :  { %v632_v16 = vpop.xlane.xlu0 %631 }
 0x377   :  { %v653_v15 = vadd.f32 1e-05, %v649_v14  ;;  %v634_v17 = vmul.f32 0.015625, %v632_v16 }
 0x378   :  { %v642_v18 = vpop.xlane.xlu2 %641 }
 0x379   :  { %764 = vrsqrt.f32 %v653_v15  ;;  %v646_v19 = vmul.f32 %v634_v17, %v634_v17  ;;  %v644_v20 = vmul.f32 0.015625, %v642_v18  ;;  %vm661_vm6 = vweird.f32 %v653_v15 }
 0x37a   :  { %v652_v44 = vsub.f32 %v625_v4, %v634_v17 }
 0x37b   :  { %v648_v21 = vsub.f32 %v644_v20, %v646_v19 }
 0x37d   :  { %v650_v22 = vmax.f32 %v648_v21, 0.0 }
 0x37f   :  { %v765_v23 = vpop.eup %764  ;;  %v654_v27 = vadd.f32 1e-05, %v650_v22 }
 0x380   :  { %v656_v24 = vmul.f32 %v765_v23, %v653_v15  ;;  %vm662_vm5 = vweird.f32 %v765_v23 }
 0x381   :  { %766 = vrsqrt.f32 %v654_v27  ;;  %vm663_vm7 = vmor %vm661_vm6, %vm662_vm5  ;;  %vm671_vm9 = vweird.f32 %v654_v27 }
 0x382   :  { %v657_v28 = vmul.f32 %v765_v23, %v656_v24 }
 0x384   :  { %v658_v25 = vmul.f32 0.5, %v657_v28 }
 0x386   :  { %v659_v26 = vsub.f32 1.5, %v658_v25 }
 0x387   :  { %v767_v29 = vpop.eup %766 }
 0x388   :  { %v660_v30 = vmul.f32 %v765_v23, %v659_v26  ;;  %v666_v32 = vmul.f32 %v767_v29, %v654_v27  ;;  %vm672_vm8 = vweird.f32 %v767_v29  ;;  %v692_v60 = vpop.permute.xlu1 %691 }
 0x389   :  { %vm673_vm11 = vmor %vm671_vm9, %vm672_vm8  ;;  %v690_v47 = vpop.permute.xlu0 %689 }
 0x38a   :  { %v664_v34 = vsel %vm663_vm7, %v765_v23, %v660_v30  ;;  %v667_v35 = vmul.f32 %v767_v29, %v666_v32 }
 0x38b   :  { %v675_v36 = vmul.f32 %v664_v34, %v651_v31 }
 0x38c   :  { %v668_v37 = vmul.f32 0.5, %v667_v35 }
 0x38d   :  { %v677_v39 = vmul.f32 %v675_v36, %v145_v33 }
 0x38e   :  { %v669_v40 = vsub.f32 1.5, %v668_v37 }
 0x38f   :  { %v679_v41 = vadd.f32 %v677_v39, %v146_v38 }
 0x390   :  { %v670_v42 = vmul.f32 %v767_v29, %v669_v40 }
 0x391   :  { %vm681_vm10 = vcmp.gt.f32.partialorder %v679_v41, 0.0  ;;  %v683_v43 = vmul.f32 0.01, %v679_v41 }
 0x392   :  { %v674_v46 = vsel %vm673_vm11, %v767_v29, %v670_v42 }
 0x393   :  { %v685_v48 = vsel %vm681_vm10, %v679_v41, %v683_v43  ;;  %v676_v49 = vmul.f32 %v674_v46, %v652_v44 }
 0x394   :  { %v695_v50 = vadd.f32 %v690_v47, %v685_v48 }
 0x395   :  { %v678_v53 = vmul.f32 %v676_v49, %v145_v33 }
 0x396   :  { %v697_v54 = vadd.f32 %v695_v50, %v147_v45 }
 0x397   :  { %v680_v55 = vadd.f32 %v678_v53, %v146_v38 }
 0x398   :  { %v699_v56 = vmul.f32 %v697_v54, %v148_v51 }
 0x399   :  { %vm682_vm12 = vcmp.gt.f32.partialorder %v680_v55, 0.0  ;;  %v684_v57 = vmul.f32 0.01, %v680_v55 }
 0x39a   :  { %v701_v58 = vsel %vm626_vm4, %v699_v56, 0.0 }
 0x39b   :  { %702 = vadd.xlane.f32.xlu2 %v701_v58  ;;  %v686_v59 = vsel %vm682_vm12, %v680_v55, %v684_v57 }
 0x39c   :  { %v696_v61 = vadd.f32 %v692_v60, %v686_v59 }
 0x39e   :  { %v698_v52 = vadd.f32 %v696_v61, %v147_v45 }
 0x3a0   :  { %v700_v62 = vmul.f32 %v698_v52, %v148_v51 }
 0x3a2   :  { %v704_v63 = vsel %vm626_vm4, %v700_v62, 0.0 }
 0x3a3   :  { %705 = vadd.xlane.f32.xlu2 %v704_v63 }
 0x40e   :  { %v703_v1 = vpop.xlane.xlu2 %702 }
 0x40f   :  { %v707_v2 = vadd.f32 %v703_v1, %v149_v0 }
 0x411   :  { %710 = vst.msk [vmem:[%s1094_s7] sm:$0xff] %vm709_vm13, %v707_v2 }
 0x416   :  { %v706_v3 = vpop.xlane.xlu2 %705 }
 0x417   :  { %v708_v4 = vadd.f32 %v706_v3, %v149_v0 }
 0x419   :  { %711 = vst.msk [vmem:[%s1094_s7 + $0x8] sm:$0xff] %vm709_vm13, %v708_v4 }
 0x41a   :  { %716 = vsyncpa [#allocation3], 1 }
 0x41b   :  { %717 = vsyncpa [#allocation5], 1 }
 0x41c   :  { %718 = vsyncpa [#allocation8], 1 }
 0x41d   :  { %719 = vsyncpa [#allocation11], 1 }

</bundles_post_ra>
